<compile_context>
chip_gen: v5e
topology: v5e:2x2
jax: 0.10.0
libtpu: 0.0.40
codegen_flags: <defaults>
</compile_context>

<pallas_src>
import math

import jax
import jax.numpy as jnp
from jax.experimental import pallas as pl
from jax.experimental.pallas import tpu as pltpu


def _round_up(a, b):
    return (a + b - 1) // b * b


def _make_kernel(use_bf16_matmul):
    def kernel(scale_ref, x_ref, xz_ref, z_ref, o_ref, acc_ref):
        # scale_ref: SMEM (1, 1) holding 0.5 * exp(-2 * log_scale)
        # x_ref : VMEM (1, tn, Dx)
        # xz_ref: VMEM (1, Dx, tm)
        # z_ref : VMEM (1, tm, C_pad)   (already (M, C) oriented)
        # o_ref : VMEM (1, tn, C_pad)
        # acc_ref: VMEM (tn, C_pad) f32 accumulator over the M-reduction axis.
        m_idx = pl.program_id(2)

        @pl.when(m_idx == 0)
        def _():
            acc_ref[...] = jnp.zeros_like(acc_ref)

        inv_two_sigma2 = scale_ref[0, 0]

        x = x_ref[0].astype(jnp.float32)    # (tn, Dx)
        xz = xz_ref[0].astype(jnp.float32)  # (Dx, tm)

        # Pairwise squared distances on the VPU via broadcast diff; Dx is tiny
        # and static so this unrolls to a couple of elementwise ops.
        dx = x.shape[1]
        diff = x[:, 0:1] - xz[0:1, :]                     # (tn, tm)
        dists2 = diff * diff
        for d in range(1, dx):
            diff = x[:, d:d + 1] - xz[d:d + 1, :]
            dists2 = dists2 + diff * diff

        weights = jnp.exp(-inv_two_sigma2 * dists2)       # (tn, tm), in [0, 1]

        z_tile = z_ref[0]                                 # (tm, C_pad)
        if use_bf16_matmul:
            weights = weights.astype(jnp.bfloat16)
            z_tile = z_tile.astype(jnp.bfloat16)

        acc_ref[...] += jnp.dot(weights, z_tile,
                                preferred_element_type=jnp.float32)

        @pl.when(m_idx == pl.num_programs(2) - 1)
        def _():
            o_ref[0] = acc_ref[...].astype(o_ref.dtype)

    return kernel


def setconv1d_decoder(xz, z, x, log_scale, *, tn=None, tm=None,
                      use_bf16_matmul=False):
    """Pallas implementation of SetConv1dDecoder.forward.

    xz: (B, M, Dx) float32
    z : (B, C, M)  float32
    x : (B, N, Dx) float32
    log_scale: scalar float32 parameter
    returns: (B, N, C) float32
    """
    B, M, Dx = xz.shape
    _, C, Mz = z.shape
    _, N, Dx2 = x.shape
    assert Mz == M and Dx2 == Dx

    LANE, SUB = 128, 8
    if tn is None:
        tn = min(256, _round_up(N, SUB))
    if tm is None:
        tm = min(512, _round_up(M, LANE))
    C_pad = _round_up(C, LANE)
    N_pad = _round_up(N, tn)
    M_pad = _round_up(M, tm)

    f32 = jnp.float32
    # x padded along N (extra rows are sliced off at the end).
    x_p = jnp.pad(x.astype(f32), ((0, 0), (0, N_pad - N), (0, 0)))
    # xz laid out (B, Dx, M_pad) so the kernel gets an (1, tm) row per dim.
    xz_p = jnp.pad(jnp.swapaxes(xz.astype(f32), 1, 2),
                   ((0, 0), (0, 0), (0, M_pad - M)))
    # z pre-transposed to (B, M, C) and padded; padded M rows are zero so
    # their (spurious) weights contribute nothing to the accumulation.
    z_p = jnp.pad(jnp.swapaxes(z.astype(f32), 1, 2),
                  ((0, 0), (0, M_pad - M), (0, C_pad - C)))

    # Hoisted scalar: 0.5 * exp(-2 * log_scale).
    scale = jnp.reshape(
        0.5 * jnp.exp(-2.0 * jnp.asarray(log_scale, f32)), (1, 1))

    grid = (B, N_pad // tn, M_pad // tm)

    grid_spec = pltpu.PrefetchScalarGridSpec(
        num_scalar_prefetch=0,
        grid=grid,
        in_specs=[
            pl.BlockSpec((1, 1), lambda b, n, m: (0, 0),
                         memory_space=pltpu.SMEM),
            pl.BlockSpec((1, tn, Dx), lambda b, n, m: (b, n, 0)),
            pl.BlockSpec((1, Dx, tm), lambda b, n, m: (b, 0, m)),
            pl.BlockSpec((1, tm, C_pad), lambda b, n, m: (b, m, 0)),
        ],
        out_specs=pl.BlockSpec((1, tn, C_pad), lambda b, n, m: (b, n, 0)),
        scratch_shapes=[pltpu.VMEM((tn, C_pad), jnp.float32)],
    )

    out_padded = pl.pallas_call(
        _make_kernel(use_bf16_matmul),
        out_shape=jax.ShapeDtypeStruct((B, N_pad, C_pad), jnp.float32),
        grid_spec=grid_spec,
        compiler_params=pltpu.CompilerParams(
            dimension_semantics=("parallel", "parallel", "arbitrary"),
            vmem_limit_bytes=32 * 1024 * 1024),
    )(scale, x_p, xz_p, z_p)

    return out_padded[:, :N, :C]


def _reference(xz, z, x, log_scale):
    # Pure-JAX reference matching the PyTorch module.
    dists2 = jnp.sum(
        (x[:, :, None, :] - xz[:, None, :, :]) ** 2, axis=-1)  # (B, N, M)
    weights = jnp.exp(-0.5 * dists2 / jnp.exp(2.0 * log_scale))
    zt = jnp.swapaxes(z, -1, -2)                                # (B, M, C)
    return jnp.einsum("bnm,bmc->bnc", weights, zt)


if __name__ == "__main__":
    # Deterministic parameter init, as in __init__:
    # log_scale = log(2 / discretisation.points_per_unit)
    points_per_unit = 32.0
    log_scale = jnp.float32(math.log(2.0 / points_per_unit))

    key = jax.random.PRNGKey(0)

    # Case 1: small shapes matching the module's typical 1D use.
    B, M, C, N, Dx = 2, 16, 4, 8, 1
    k1, k2, k3, k4, k5, k6 = jax.random.split(key, 6)
    xz = jax.random.uniform(k1, (B, M, Dx), jnp.float32, -1.0, 1.0)
    z = jax.random.normal(k2, (B, C, M), jnp.float32)
    x = jax.random.uniform(k3, (B, N, Dx), jnp.float32, -1.0, 1.0)

    out = setconv1d_decoder(xz, z, x, log_scale)
    out = jax.block_until_ready(out)
    ref = _reference(xz, z, x, log_scale)
    assert out.shape == (B, N, C)
    assert jnp.allclose(out, ref, atol=1e-4, rtol=1e-4)

    # Case 2: exercises N/M/C padding, Dx>1, and the M-reduction grid axis.
    B2, M2, C2, N2, Dx2 = 2, 300, 4, 40, 2
    xz2 = jax.random.uniform(k4, (B2, M2, Dx2), jnp.float32, -1.0, 1.0)
    z2 = jax.random.normal(k5, (B2, C2, M2), jnp.float32)
    x2 = jax.random.uniform(k6, (B2, N2, Dx2), jnp.float32, -1.0, 1.0)

    out2 = setconv1d_decoder(xz2, z2, x2, log_scale)
    out2 = jax.block_until_ready(out2)
    ref2 = _reference(xz2, z2, x2, log_scale)
    assert out2.shape == (B2, N2, C2)
    assert jnp.allclose(out2, ref2, atol=1e-4, rtol=1e-4)

    print("KERNEL_OK")
</pallas_src>

<mosaic_0001>
module attributes {stable_mosaic.version = 11 : i64} {
  func.func @kernel(%arg0: i32, %arg1: i32, %arg2: i32, %arg3: memref<1x1xf32, #tpu.memory_space<smem>>, %arg4: memref<1x8x1xf32, #tpu.memory_space<vmem>>, %arg5: memref<1x1x128xf32, #tpu.memory_space<vmem>>, %arg6: memref<1x128x128xf32, #tpu.memory_space<vmem>>, %arg7: memref<1x8x128xf32, #tpu.memory_space<vmem>>, %arg8: memref<8x128xf32, #tpu.memory_space<vmem>>) attributes {dimension_semantics = [#tpu.dimension_semantics<parallel>, #tpu.dimension_semantics<parallel>, #tpu.dimension_semantics<arbitrary>], iteration_bounds = array<i64: 2, 1, 1>, scalar_prefetch = 0 : i64, scratch_operands = 1 : i64, tpu.core_type = #tpu.core_type<tc>, window_params = [{transform_indices = @transform_0, window_bounds = array<i64: 1, 1>}, {transform_indices = @transform_1, window_bounds = array<i64: 1, 8, 1>}, {transform_indices = @transform_2, window_bounds = array<i64: 1, 1, 128>}, {transform_indices = @transform_3, window_bounds = array<i64: 1, 128, 128>}, {transform_indices = @transform_4, window_bounds = array<i64: 1, 8, 128>}]} {
    %c0_i32 = arith.constant 0 : i32
    %0 = arith.cmpi eq, %arg2, %c0_i32 : i32
    %1 = arith.extui %0 : i1 to i32
    %c0_i32_0 = arith.constant 0 : i32
    %2 = arith.cmpi ne, %1, %c0_i32_0 : i32
    scf.if %2 {
      %cst_18 = arith.constant 0.000000e+00 : f32
      %25 = vector.broadcast %cst_18 : f32 to vector<8x128xf32>
      %c0_19 = arith.constant 0 : index
      %c0_20 = arith.constant 0 : index
      %26 = vector.load %arg8[%c0_19, %c0_20] : memref<8x128xf32, #tpu.memory_space<vmem>>, vector<8x128xf32>
      tpu.vector_store %arg8[%c0_19, %c0_20], %25 {strides = array<i32>} : memref<8x128xf32, #tpu.memory_space<vmem>>, vector<8x128xf32>,
    } else {
    }
    %c0 = arith.constant 0 : index
    %c0_1 = arith.constant 0 : index
    %3 = memref.load %arg3[%c0, %c0_1] : memref<1x1xf32, #tpu.memory_space<smem>>
    %c0_2 = arith.constant 0 : index
    %c0_3 = arith.constant 0 : index
    %c0_4 = arith.constant 0 : index
    %4 = vector.load %arg4[%c0_2, %c0_3, %c0_4] : memref<1x8x1xf32, #tpu.memory_space<vmem>>, vector<1x8x1xf32>
    %5 = vector.shape_cast %4 : vector<1x8x1xf32> to vector<8x1xf32>
    %c0_5 = arith.constant 0 : index
    %c0_6 = arith.constant 0 : index
    %c0_7 = arith.constant 0 : index
    %6 = vector.load %arg5[%c0_5, %c0_6, %c0_7] : memref<1x1x128xf32, #tpu.memory_space<vmem>>, vector<1x1x128xf32>
    %7 = vector.shape_cast %6 : vector<1x1x128xf32> to vector<1x128xf32>
    %8 = vector.broadcast %5 : vector<8x1xf32> to vector<8x128xf32>
    %9 = vector.broadcast %7 : vector<1x128xf32> to vector<8x128xf32>
    %10 = arith.subf %8, %9 : vector<8x128xf32>
    %11 = arith.mulf %10, %10 : vector<8x128xf32>
    %cst = arith.constant 0.000000e+00 : f32
    %12 = arith.subf %cst, %3 : f32
    %13 = vector.broadcast %12 : f32 to vector<8x128xf32>
    %14 = arith.mulf %13, %11 : vector<8x128xf32>
    %15 = math.exp %14 : vector<8x128xf32>
    %c0_8 = arith.constant 0 : index
    %c0_9 = arith.constant 0 : index
    %c0_10 = arith.constant 0 : index
    %16 = vector.load %arg6[%c0_8, %c0_9, %c0_10] : memref<1x128x128xf32, #tpu.memory_space<vmem>>, vector<1x128x128xf32>
    %17 = vector.shape_cast %16 : vector<1x128x128xf32> to vector<128x128xf32>
    %c0_11 = arith.constant 0 : index
    %c0_12 = arith.constant 0 : index
    %18 = vector.load %arg8[%c0_11, %c0_12] : memref<8x128xf32, #tpu.memory_space<vmem>>, vector<8x128xf32>
    %cst_13 = arith.constant dense<0.000000e+00> : vector<8x128xf32>
    %19 = tpu.matmul %15, %17, %cst_13 {dimension_numbers = #tpu.dot_dimension_numbers<[1], [0], [0], [1], [0, 0, 1, 1], [], []>} : vector<8x128xf32>, vector<128x128xf32>, vector<8x128xf32> -> vector<8x128xf32>
    %20 = arith.addf %18, %19 : vector<8x128xf32>
    %c0_14 = arith.constant 0 : index
    %c0_15 = arith.constant 0 : index
    %21 = vector.load %arg8[%c0_14, %c0_15] : memref<8x128xf32, #tpu.memory_space<vmem>>, vector<8x128xf32>
    tpu.vector_store %arg8[%c0_14, %c0_15], %20 {strides = array<i32>} : memref<8x128xf32, #tpu.memory_space<vmem>>, vector<8x128xf32>,
    %c0_i32_16 = arith.constant 0 : i32
    %22 = arith.cmpi eq, %arg2, %c0_i32_16 : i32
    %23 = arith.extui %22 : i1 to i32
    %c0_i32_17 = arith.constant 0 : i32
    %24 = arith.cmpi ne, %23, %c0_i32_17 : i32
    scf.if %24 {
      %c0_18 = arith.constant 0 : index
      %c0_19 = arith.constant 0 : index
      %25 = vector.load %arg8[%c0_18, %c0_19] : memref<8x128xf32, #tpu.memory_space<vmem>>, vector<8x128xf32>
      %c0_20 = arith.constant 0 : index
      %c0_21 = arith.constant 0 : index
      %c0_22 = arith.constant 0 : index
      %26 = vector.load %arg7[%c0_20, %c0_21, %c0_22] : memref<1x8x128xf32, #tpu.memory_space<vmem>>, vector<1x8x128xf32>
      %27 = vector.shape_cast %26 : vector<1x8x128xf32> to vector<8x128xf32>
      %28 = vector.shape_cast %25 : vector<8x128xf32> to vector<1x8x128xf32>
      tpu.vector_store %arg7[%c0_20, %c0_21, %c0_22], %28 {strides = array<i32>} : memref<1x8x128xf32, #tpu.memory_space<vmem>>, vector<1x8x128xf32>,
    } else {
    }
    return
  }
  func.func @transform_0(%arg0: i32, %arg1: i32, %arg2: i32) -> (i32, i32) {
    %c0_i32 = arith.constant 0 : i32
    %c0_i32_0 = arith.constant 0 : i32
    %c0_i32_1 = arith.constant 0 : i32
    return %c0_i32, %c0_i32_0 : i32, i32
  }
  func.func @transform_1(%arg0: i32, %arg1: i32, %arg2: i32) -> (i32, i32, i32) {
    %c0_i32 = arith.constant 0 : i32
    %c0_i32_0 = arith.constant 0 : i32
    return %arg0, %arg1, %c0_i32 : i32, i32, i32
  }
  func.func @transform_2(%arg0: i32, %arg1: i32, %arg2: i32) -> (i32, i32, i32) {
    %c0_i32 = arith.constant 0 : i32
    %c0_i32_0 = arith.constant 0 : i32
    return %arg0, %c0_i32, %arg2 : i32, i32, i32
  }
  func.func @transform_3(%arg0: i32, %arg1: i32, %arg2: i32) -> (i32, i32, i32) {
    %c0_i32 = arith.constant 0 : i32
    %c0_i32_0 = arith.constant 0 : i32
    return %arg0, %arg2, %c0_i32 : i32, i32, i32
  }
  func.func @transform_4(%arg0: i32, %arg1: i32, %arg2: i32) -> (i32, i32, i32) {
    %c0_i32 = arith.constant 0 : i32
    %c0_i32_0 = arith.constant 0 : i32
    return %arg0, %arg1, %c0_i32 : i32, i32, i32
  }
}

</mosaic_0001>

<bundles_post_ra>
// kernel: tpu_custom_call.1
= control target key start
LH: loop header
LB: loop body
LE: loop exit
PB: predicated region body
PF: predicated region fallthrough
CT: control target
= control target key end

     0   :  { %s875_s0 = inlined_call_operand.<no memory space> [shape: f32[1,1], index: 0, kind: input, shape index: {}]   ;;  %s876_s1 = inlined_call_operand.vmem [shape: f32[2,8,1], index: 1, kind: input, shape index: {}]   ;;  %s877_s2 = inlined_call_operand.vmem [shape: f32[2,1,128], index: 2, kind: input, shape index: {}]   ;;  %s878_s3 = inlined_call_operand.hbm [shape: f32[2,128,128], index: 3, kind: input, shape index: {}]   ;;  %s879_s4 = inlined_call_operand.hbm [shape: f32[2,8,128], index: 4, kind: output, shape index: {}]  }
   0x1   :  { %9 = sst [smem:[#allocation3]] %s875_s0 }
   0x2   :  { %10 = vsyncpa [#allocation5], 0 }
   0x3   :  { %12 = vsyncpa [#allocation5 + $0x1], 0 }
   0x4   :  { %13 = vsyncpa [#allocation6], 0 }
   0x5   :  { %15 = vsyncpa [#allocation6 + $0x1], 0  ;;  %s724_s17 = smov 0   ;;  %s726_s18 = smov 0  }
   0x6   :  { %s728_s19 = smov 0   ;;  %s730_s20 = smov 0  }
   0x7   :  { %s732_s21 = smov 0   ;;  %s734_s22 = smov 0  }
   0x8 LB: > { %s494_s0 = sadd.s32 4294967295, %s691_s22   ;;  %s495_s23 = sadd.s32 4294967294, %s691_s22   ;;  %s691_s22 = sphi %s734_s22, %s21_s22   ;;  %s687_s21 = sphi %s732_s21, %s888_s21   ;;  %s683_s20 = sphi %s730_s20, %s887_s20   ;;  %s679_s19 = sphi %s728_s19, %s886_s19   ;;  %s675_s18 = sphi %s726_s18, %s885_s18   ;;  %s671_s17 = sphi %s724_s17, %s884_s17  }
   0x9   : > { %s40_s24 = sadd.s32 1, %s687_s21  ;;  %s126_s25 = sadd.s32 1, %s679_s19 }
   0xa   : > { %p42_p0 = scmp.ge.s32.totalorder %s40_s24, 2  ;;  %p133_p1 = scmp.ne.s32.totalorder %s679_s19, %s675_s18 }
   0xb   : > { %p134_p2 = scmp.eq.s32.totalorder %s691_s22, 0  ;;  %p139_p3 = scmp.ne.s32.totalorder %s675_s18, %s671_s17 }
   0xc   : > { %s890_s24 = smov (%p42_p0, %s40_s24), 0  ;;  %p140_p5 = scmp.eq.s32.totalorder %s494_s0, 0 }
   0xd   : > { %p765_p4 = por %p134_p2, %p133_p1  ;;  %s121_s27 = ssub.s32 %s687_s21, %s890_s24 }
   0xe   : > { %p165_p6 = scmp.eq.s32.totalorder %s494_s0, 1  ;;  %p124_p7 = scmp.eq.s32.totalorder %s121_s27, 0 }
   0xf   : > { %p771_p8 = por %p140_p5, %p139_p3  ;;  %p171_p10 = scmp.eq.s32.totalorder %s495_s23, 1 }
  0x10   : > { %p775_p9 = por %p165_p6, %p133_p1  ;;  %p497_p12 = scmp.ge.s32.totalorder %s691_s22, 2 }
  0x11   : > { %s780_s30 = scalar_select %p124_p7, %s679_s19, %s126_s25  }
  0x12   : > { %p782_p11 = por %p171_p10, %p139_p3  ;;  %p522_p13 = scmp.lt.s32.totalorder %s691_s22, 2 }
  0x13   : > { %s213_s6 = sand.u32 1, %s679_s19   ;;  %s509_s8 = sshll.u32 %s687_s21, 7 }
  0x14   : > { %s498_s7 = sshll.u32 %s213_s6, 7  ;;  %s224_s11 = scalar_lea.hbm %s878_s3, %s509_s8 }
  0x15   : > { %s217_s12 = scalar_lea.vmem [#allocation4], %s498_s7  ;;  %s225_s14 = sshll.u32 %s224_s11, 4  ;;  %s226_s14 = int_to_ptr.hbm [resolvable:$true] %s225_s14 }
  0x16   : > { %s227_s13 = sshll.u32 %s217_s12, 4  ;;  %p515_p0 = pnand %p522_p13, %p765_p4  ;;  %s228_s13 = int_to_ptr.vmem [resolvable:$true] %s227_s13 }
  0x17   : > { %p501_p1 = scmp.ge.s32.totalorder %s691_s22, 1  ;;  %s214_s15 = scalar_lea.sflag [#allocation5], %s213_s6 }
  0x18   : > { %s693_s16 = smov 128   ;;  %s694_s0 = smov 8  }
  0x19   : > { %517 = dma.hbm_to_vmem [thread:$0]  (!%p515_p0), %s226_s14, 2048, %s228_s13, %s214_s15, %s693_s16, %s693_s16, %s694_s0  }
  0x1a   : > { %p235_p2 = scmp.lt.s32.totalorder %s691_s22, 3 }
  0x1c   : > { %p236_p3 = pnand %p501_p1, %p235_p2 }
  0x1d   : > { %s798_s23 = sand.u32 (!%p236_p3), 1, %s675_s18  }
  0x1e   : > { %239 = sbr.rel (%p236_p3) target bundleno = 302 (0x12e), region = 36  ;;  %s502_s25 = sshll.u32 (!%p236_p3), %s798_s23, 7 }
  0x1f   : > { %s242_s27 = scalar_lea.sflag (!%p236_p3), [#allocation5], %s798_s23  ;;  %s802_s7 = scalar_lea.vmem (!%p236_p3), [#allocation4], %s502_s25 }
  0x23   : > { %662 = dma.done.wait (%p771_p8), %s242_s27, 2048  }
  0x24   : > { %664 = vsyncadd (%p771_p8), %s242_s27, 4294965248  ;;  %p284_p4 = scmp.lt.s32.totalorder %s683_s20, 1  ;;  %v695_v0 = vmov 0   ;;  %v336_v2 = vld [vmem:[%s802_s7 + $0x78] sm:$0xff]  ;;  %v335_v3 = vld [vmem:[%s802_s7 + $0x70] sm:$0xff]  ;;  %s303_s13 = sld [smem:[#allocation3]] }
  0x25   : > { %575 = vset.pattern.permute.xlu0 %v695_v0  ;;  %338 = vmatpush.msra.mxu0 %v336_v2  ;;  %v334_v4 = vld [vmem:[%s802_s7 + $0x68] sm:$0xff]  ;;  %v333_v5 = vld [vmem:[%s802_s7 + $0x60] sm:$0xff]  ;;  %v332_v6 = vld [vmem:[%s802_s7 + $0x58] sm:$0xff]  ;;  %s503_s15 = sshll.u32 %s798_s23, 3  ;;  %s506_s16 = sshll.u32 %s683_s20, 3 }
  0x26   : > { %s810_s26 = scalar_select %p284_p4, %s683_s20, 1  ;;  %v331_v7 = vld [vmem:[%s802_s7 + $0x50] sm:$0xff]  ;;  %v330_v8 = vld [vmem:[%s802_s7 + $0x48] sm:$0xff]  ;;  %v329_v9 = vld [vmem:[%s802_s7 + $0x40] sm:$0xff] }
  0x27   : > { %339 = vmatpush.msra.mxu0 %v335_v3  ;;  %v328_v10 = vld [vmem:[%s802_s7 + $0x38] sm:$0xff]  ;;  %v327_v11 = vld [vmem:[%s802_s7 + $0x30] sm:$0xff]  ;;  %v326_v12 = vld [vmem:[%s802_s7 + $0x28] sm:$0xff]  ;;  %s377_s27 = scalar_lea.hbm %s879_s4, %s506_s16  ;;  %s366_s8 = scalar_lea.sflag [#allocation6], %s798_s23 }
  0x28   : > { %s504_s6 = sshll.u32 %s810_s26, 3  ;;  %s296_s12 = scalar_lea.vmem %s877_s2, %s810_s26  ;;  %v325_v13 = vld [vmem:[%s802_s7 + $0x20] sm:$0xff]  ;;  %v324_v14 = vld [vmem:[%s802_s7 + $0x18] sm:$0xff]  ;;  %v323_v15 = vld [vmem:[%s802_s7 + $0x10] sm:$0xff] }
  0x29   : > { %s290_s28 = scalar_lea.vmem %s876_s1, %s504_s6  ;;  %340 = vmatpush.msra.mxu0 %v334_v4  ;;  %v322_v16 = vld [vmem:[%s802_s7 + $0x8] sm:$0xff]  ;;  %v321_v17 = vld [vmem:[%s802_s7] sm:$0xff]  ;;  %s283_s7 = scalar_lea.vmem [#allocation7], %s503_s15 }
  0x2a   : > { %v304_v1 = vld [vmem:[%s290_s28] sm:$0xff]  ;;  %s316_s14 = ssub.f32 0.0, %s303_s13  ;;  %s379_s26 = sshll.u32 %s283_s7, 4  ;;  %s380_s26 = int_to_ptr.vmem [resolvable:$true] %s379_s26 }
  0x2b   : > { %308 = vperm.xlu0 %575, %v304_v1   ;;  %341 = vmatpush.msra.mxu0 %v333_v5  ;;  %v576_v18 = vld [vmem:[%s296_s12] ss:$0 sm:$0xff]  ;;  %s381_s6 = sshll.u32 %s377_s27, 4  ;;  %s629_s11 = scalar_lea.hbm %s879_s4, 16  ;;  %s382_s6 = int_to_ptr.hbm [resolvable:$true] %s381_s6 }
  0x2c   : > { %v317_v21 = vstv %s316_s14  ;;  %s623_s9 = sshra.s32 %s382_s6, 4  ;;  %s624_s9 = int_to_ptr.hbm [resolvable:$true] %s623_s9 }
  0x2d   : > { %342 = vmatpush.msra.mxu0 %v332_v6  ;;  %s625_s28 = scalar_lea.hbm %s624_s9, 8  ;;  %p630_p8 = scmp.lt.s32.totalorder %s624_s9, %s879_s4 }
  0x2e   : > { %p626_p5 = scmp.ne.s32.totalorder %s624_s9, %s625_s28  ;;  %p631_p10 = scmp.lt.s32.totalorder %s629_s11, %s625_s28 }
  0x2f   : > { %343 = vmatpush.msra.mxu0 %v331_v7 }
  0x30   : > { %p627_p6 = pnand %p626_p5, %p775_p9  ;;  %p632_p13 = por %p631_p10, %p630_p8 }
  0x31   : > { %344 = vmatpush.msra.mxu0 %v330_v8 }
  0x32   : > { %p628_p7 = pneg %p627_p6 }
  0x33   : > { %345 = vmatpush.msra.mxu0 %v329_v9 }
  0x34   : > { %p633_p0 = pnand %p632_p13, %p628_p7 }
  0x35   : > { %346 = vmatpush.msra.mxu0 %v328_v10 }
  0x37   : > { %347 = vmatpush.msra.mxu0 %v327_v11 }
  0x39   : > { %348 = vmatpush.msra.mxu0 %v326_v12 }
  0x3b   : > { %349 = vmatpush.msra.mxu0 %v325_v13 }
  0x3d   : > { %350 = vmatpush.msra.mxu0 %v324_v14 }
  0x3f   : > { %351 = vmatpush.msra.mxu0 %v323_v15 }
  0x41   : > { %352 = vmatpush.msra.mxu0 %v322_v16 }
  0x43   : > { %353 = vmatpush.msra.mxu0 %v321_v17 }
  0x9d   : > { %v309_v19 = vpop.permute.xlu0 %308 }
  0x9e   : > { %v314_v20 = vsub.f32 %v309_v19, %v576_v18 }
  0xa0   : > { %v315_v22 = vmul.f32 %v314_v20, %v314_v20 }
  0xa2   : > { %v318_v23 = vmul.f32 %v317_v21, %v315_v22 }
  0xa4   : > { %v319_v24 = vmul.f32 1.442695, %v318_v23 }
  0xa6   : > { %577 = vpow2.f32 %v319_v24 }
  0xac   : > { %v578_v25 = vpop.eup %577 }
  0xad   : > { %354 = vmatmul.f32.vlgmr.msra.gmra.mxu0 %v578_v25 }
 0x12a   : > { %v355_v26 = vpop.f32.mrf.mxu0 }
 0x12b   : > { %364 = vst [vmem:[%s283_s7] sm:$0xff] %v355_v26 }
 0x12c   : > { %636 = shalt.err (!%p633_p0)
}
 0x12d   : > { %512 = dma.vmem_to_hbm [thread:$0]  (%p775_p9), %s380_s26, 128, %s382_s6, %s366_s8  }
 0x12e PF: > { %s393_s23 = sand.u32 1, %s671_s17   ;;  %p519_p1 = pnand %p497_p12, %p782_p11 }
 0x12f   : > { %s394_s14 = scalar_lea.sflag [#allocation6], %s393_s23 }
 0x130   : > { %p520_p2 = pneg %p519_p1 }
 0x132   : > { %666 = dma.done.wait (%p520_p2), %s394_s14, 128  }
 0x133   : > { %668 = vsyncadd (%p520_p2), %s394_s14, 4294967168  ;;  %s21_s22 = sadd.s32 1, %s691_s22   ;;  %s884_s17 = smov %s675_s18 }
 0x134   : > { %p18_p3 = scmp.ge.s32.totalorder %s21_s22, 4   ;;  %s885_s18 = smov %s679_s19 }
 0x135   : > { %s886_s19 = smov %s780_s30  ;;  %s887_s20 = smov %s687_s21 }
 0x136   : > { %s888_s21 = smov %s890_s24  ;;  %20 = sbr.rel (!%p18_p3) target bundleno = 8 (0x8), region = 95 }
 0x13b   :  { %400 = vsyncpa [#allocation5], 1 }
 0x13c   :  { %402 = vsyncpa [#allocation5 + $0x1], 1 }
 0x13d   :  { %403 = vsyncpa [#allocation6], 1 }
 0x13e   :  { %405 = vsyncpa [#allocation6 + $0x1], 1 }

</bundles_post_ra>
